<compile_context>
chip_gen: v5e
topology: v5e:2x2
jax: 0.10.0
libtpu: 0.0.40
codegen_flags: <defaults>
</compile_context>

<pallas_src>
import functools

import jax
import jax.numpy as jnp
from jax import lax
from jax.experimental import pallas as pl
from jax.experimental.pallas import tpu as pltpu  # noqa: F401  (TPU backend)

LANE = 128  # TPU vreg lane width; pad d_out up to this for lane-dense stores.


def _self_attn_kernel(x_ref, wqkv_ref, o_ref, *, d_pad):
    """Fused QKV projection + scaled-dot-product attention for one (S, d_in) slab.

    x_ref:    (S, d_in)        f32
    wqkv_ref: (d_in, 3*d_pad)  f32  [Wq*scale | Wk | Wv], each zero-padded to d_pad
    o_ref:    (S, d_pad)       f32  lane-dense context; real output = [:, :d_out]
    """
    x = x_ref[...]
    w_qkv = wqkv_ref[...]

    # One wide MXU matmul for all three projections.
    qkv = jnp.dot(x, w_qkv, preferred_element_type=jnp.float32)      # (S, 3*d_pad)
    q = qkv[:, 0 * d_pad:1 * d_pad]   # softmax temperature already folded into Wq
    k = qkv[:, 1 * d_pad:2 * d_pad]
    v = qkv[:, 2 * d_pad:3 * d_pad]

    # Q @ K^T without materializing a transpose: contract over the feature dim.
    scores = lax.dot_general(
        q, k,
        dimension_numbers=(((1,), (1,)), ((), ())),
        preferred_element_type=jnp.float32)                          # (S, S)

    # Numerically stable softmax along the key axis (exact divide).
    m = jnp.max(scores, axis=-1, keepdims=True)
    e = jnp.exp(scores - m)
    weights = e / jnp.sum(e, axis=-1, keepdims=True)

    # context = weights @ V.  Padded V columns are zero -> padded output columns
    # are zero and get sliced off (fused under jit) in the wrapper.
    o_ref[...] = jnp.dot(weights, v, preferred_element_type=jnp.float32)


def pack_qkv_weights(w_query, w_key, w_value):
    """One-time weight transform: pad each head to 128 lanes, fuse [Wq|Wk|Wv],
    and fold the 1/sqrt(d_out) softmax temperature into the W_query columns.

    NOTE: the pad lanes must stay exactly zero — the kernel's correctness of the
    padded scores / output columns depends on it.
    """
    d_in, d_out = w_query.shape
    d_pad = max(LANE, pl.cdiv(d_out, LANE) * LANE)
    scale = 1.0 / (d_out ** 0.5)   # reference uses keys.shape[-1] == d_out

    w_qkv = jnp.zeros((d_in, 3 * d_pad), jnp.float32)
    w_qkv = w_qkv.at[:, 0 * d_pad:0 * d_pad + d_out].set(w_query.astype(jnp.float32) * scale)
    w_qkv = w_qkv.at[:, 1 * d_pad:1 * d_pad + d_out].set(w_key.astype(jnp.float32))
    w_qkv = w_qkv.at[:, 2 * d_pad:2 * d_pad + d_out].set(w_value.astype(jnp.float32))
    return w_qkv, d_pad, d_out


@functools.partial(jax.jit, static_argnames=("d_pad", "d_out"))
def self_attention_v1_apply(x, w_qkv, *, d_pad, d_out):
    """Jitted forward: pallas_call + (fused) slice back to (seq, d_out)."""
    seq, d_in = x.shape
    kernel = functools.partial(_self_attn_kernel, d_pad=d_pad)
    full = lambda shape: pl.BlockSpec(shape, lambda: (0,) * len(shape))

    out_padded = pl.pallas_call(
        kernel,
        out_shape=jax.ShapeDtypeStruct((seq, d_pad), jnp.float32),
        grid=(),
        in_specs=[
            full((seq, d_in)),
            full((d_in, 3 * d_pad)),
        ],
        out_specs=full((seq, d_pad)),
    )(x.astype(jnp.float32), w_qkv)

    return out_padded[:, :d_out]


def self_attention_v1(x, w_query, w_key, w_value):
    """Convenience wrapper matching SelfAttentiion_v1.forward.
    Prefer calling pack_qkv_weights once and reusing self_attention_v1_apply."""
    w_qkv, d_pad, d_out = pack_qkv_weights(w_query, w_key, w_value)
    return self_attention_v1_apply(x, w_qkv, d_pad=d_pad, d_out=d_out)


def _reference(x, wq, wk, wv):
    q = x @ wq
    k = x @ wk
    v = x @ wv
    scores = q @ k.T
    weights = jax.nn.softmax(scores / (k.shape[-1] ** 0.5), axis=-1)
    return weights @ v


if __name__ == "__main__":
    # Small shapes implied by the module: seq tokens x d_in features -> d_out.
    seq, d_in, d_out = 8, 16, 32

    key = jax.random.PRNGKey(0)
    kx, kq, kk, kv = jax.random.split(key, 4)

    # Inputs + deterministic parameter init (uniform [0,1), like torch.rand).
    x = jax.random.normal(kx, (seq, d_in), dtype=jnp.float32)
    w_query = jax.random.uniform(kq, (d_in, d_out), dtype=jnp.float32)
    w_key = jax.random.uniform(kk, (d_in, d_out), dtype=jnp.float32)
    w_value = jax.random.uniform(kv, (d_in, d_out), dtype=jnp.float32)

    # Weight packing happens ONCE (weights are static parameters); the jitted
    # forward only runs the pallas_call + fused output slice per invocation.
    w_qkv, d_pad, _ = pack_qkv_weights(w_query, w_key, w_value)

    out = self_attention_v1_apply(x, w_qkv, d_pad=d_pad, d_out=d_out)
    out = jax.block_until_ready(out)

    ref = _reference(x, w_query, w_key, w_value)
    assert out.shape == (seq, d_out)
    assert jnp.allclose(out, ref, atol=1e-4, rtol=1e-4), "mismatch vs reference"

    print("KERNEL_OK")
</pallas_src>

<mosaic_0001>
module attributes {stable_mosaic.version = 11 : i64} {
  func.func @_self_attn_kernel(%arg0: memref<8x16xf32, #tpu.memory_space<vmem>>, %arg1: memref<16x384xf32, #tpu.memory_space<vmem>>, %arg2: memref<8x128xf32, #tpu.memory_space<vmem>>) attributes {dimension_semantics = [], scalar_prefetch = 0 : i64, scratch_operands = 0 : i64, tpu.core_type = #tpu.core_type<tc>} {
    %c0 = arith.constant 0 : index
    %c0_0 = arith.constant 0 : index
    %0 = vector.load %arg0[%c0, %c0_0] : memref<8x16xf32, #tpu.memory_space<vmem>>, vector<8x16xf32>
    %c0_1 = arith.constant 0 : index
    %c0_2 = arith.constant 0 : index
    %1 = vector.load %arg1[%c0_1, %c0_2] : memref<16x384xf32, #tpu.memory_space<vmem>>, vector<16x384xf32>
    %cst = arith.constant dense<0.000000e+00> : vector<8x384xf32>
    %2 = tpu.matmul %0, %1, %cst {dimension_numbers = #tpu.dot_dimension_numbers<[1], [0], [0], [1], [0, 0, 1, 1], [], []>} : vector<8x16xf32>, vector<16x384xf32>, vector<8x384xf32> -> vector<8x384xf32>
    %3 = vector.extract_strided_slice %2 {offsets = [0, 0], sizes = [8, 128], strides = [1, 1]} : vector<8x384xf32> to vector<8x128xf32>
    %4 = vector.extract_strided_slice %2 {offsets = [0, 128], sizes = [8, 128], strides = [1, 1]} : vector<8x384xf32> to vector<8x128xf32>
    %5 = vector.extract_strided_slice %2 {offsets = [0, 256], sizes = [8, 128], strides = [1, 1]} : vector<8x384xf32> to vector<8x128xf32>
    %cst_3 = arith.constant dense<0.000000e+00> : vector<8x8xf32>
    %6 = tpu.matmul %3, %4, %cst_3 {dimension_numbers = #tpu.dot_dimension_numbers<[1], [1], [0], [0], [0, 0, 1, 0], [], []>} : vector<8x128xf32>, vector<8x128xf32>, vector<8x8xf32> -> vector<8x8xf32>
    %cst_4 = arith.constant dense<0xFF800000> : vector<8xf32>
    %7 = vector.multi_reduction <maximumf>, %6, %cst_4 [1] : vector<8x8xf32> to vector<8xf32>
    %8 = vector.shape_cast %7 : vector<8xf32> to vector<8x1xf32>
    %9 = vector.broadcast %8 : vector<8x1xf32> to vector<8x8xf32>
    %10 = arith.subf %6, %9 : vector<8x8xf32>
    %11 = math.exp %10 : vector<8x8xf32>
    %cst_5 = arith.constant dense<0.000000e+00> : vector<8xf32>
    %12 = vector.multi_reduction <add>, %11, %cst_5 [1] : vector<8x8xf32> to vector<8xf32>
    %13 = vector.shape_cast %12 : vector<8xf32> to vector<8x1xf32>
    %14 = vector.broadcast %13 : vector<8x1xf32> to vector<8x8xf32>
    %15 = arith.divf %11, %14 : vector<8x8xf32>
    %cst_6 = arith.constant dense<0.000000e+00> : vector<8x128xf32>
    %16 = tpu.matmul %15, %5, %cst_6 {dimension_numbers = #tpu.dot_dimension_numbers<[1], [0], [0], [1], [0, 0, 1, 1], [], []>} : vector<8x8xf32>, vector<8x128xf32>, vector<8x128xf32> -> vector<8x128xf32>
    %c0_7 = arith.constant 0 : index
    %c0_8 = arith.constant 0 : index
    %17 = vector.load %arg2[%c0_7, %c0_8] : memref<8x128xf32, #tpu.memory_space<vmem>>, vector<8x128xf32>
    tpu.vector_store %arg2[%c0_7, %c0_8], %16 {strides = array<i32>} : memref<8x128xf32, #tpu.memory_space<vmem>>, vector<8x128xf32>,
    return
  }
}

</mosaic_0001>

<bundles_post_ra>
// kernel: self_attention_v1_apply.1
= control target key start
LH: loop header
LB: loop body
LE: loop exit
PB: predicated region body
PF: predicated region fallthrough
CT: control target
= control target key end

     0   :  { %7 = vsyncpa [#allocation3], 0  ;;  %s326_s0 = inlined_call_operand.hbm [shape: f32[8,16], index: 0, kind: input, shape index: {}]   ;;  %s327_s1 = inlined_call_operand.hbm [shape: f32[16,384], index: 1, kind: input, shape index: {}]   ;;  %s328_s2 = inlined_call_operand.hbm [shape: f32[8,128], index: 2, kind: output, shape index: {}]  }
   0x1   :  { %8 = vsyncpa [#allocation6], 0 }
   0x2   :  { %9 = vsyncpa [#allocation4], 0  ;;  %s15_s11 = sshll.u32 %s326_s0, 4  ;;  %s291_s12 = smov [#allocation2]   ;;  %s16_s11 = int_to_ptr.hbm [resolvable:$true] %s15_s11 }
   0x3   :  { %s17_s13 = sshll.u32 %s291_s12, 4  ;;  %s25_s16 = sshll.u32 %s327_s1, 4  ;;  %s18_s13 = int_to_ptr.vmem [resolvable:$true] %s17_s13  ;;  %s26_s16 = int_to_ptr.hbm [resolvable:$true] %s25_s16 }
   0x4   :  { %20 = dma.hbm_to_vmem [thread:$0]  %s16_s11, 128, %s18_s13, [#allocation3]  }
   0x5   :  { %s292_s17 = smov [#allocation5]   ;;  %s293_s19 = smov 384  }
   0x6   :  { %s27_s18 = sshll.u32 %s292_s17, 4  ;;  %s294_s20 = smov 24   ;;  %s28_s18 = int_to_ptr.vmem [resolvable:$true] %s27_s18 }
   0x7   :  { %33 = dma.hbm_to_vmem [thread:$0]  %s26_s16, 768, %s28_s18, [#allocation6], %s293_s19, %s293_s19, %s294_s20  }
   0x8   :  { %285 = dma.done.wait [#allocation3], 128  }
   0x9   :  { %286 = vsyncadd [#allocation3], 4294967168 }
   0xa   :  { %287 = dma.done.wait [#allocation6], 768  }
   0xb   :  { %288 = vsyncadd [#allocation6], 4294966528  ;;  %v47_v0 = vld [vmem:[#allocation5 + $0x20] sm:$0xff]  ;;  %v44_v1 = vld [vmem:[#allocation5 + $0x8] sm:$0xff]  ;;  %vm49_vm0 = vcmask 130048   ;;  %vm133_vm1 = vcmask 64512  }
   0xc   :  { %v46_v2 = vld [vmem:[#allocation5 + $0x18] sm:$0xff]  ;;  %87 = vmatpush.msra.mxu1 %v47_v0  ;;  %v43_v4 = vld [vmem:[#allocation5] sm:$0xff]  ;;  %v48_v9 = vld [vmem:[#allocation5 + $0x28] sm:$0xff]  ;;  %s295_s0 = smov [#allocation7]   ;;  %s189_s23 = sshll.u32 %s328_s2, 4  ;;  %s190_s23 = int_to_ptr.hbm [resolvable:$true] %s189_s23 }
   0xd   :  { %67 = vmatpush.msra.mxu0 %v46_v2  ;;  %v42_v3 = vld [vmem:[#allocation2] sm:$0xff]  ;;  %v45_v10 = vld [vmem:[#allocation5 + $0x10] sm:$0xff]  ;;  %107 = vmatpush.msra.mxu2 %v48_v9  ;;  %s187_s1 = sshll.u32 %s295_s0, 4  ;;  %s188_s1 = int_to_ptr.vmem [resolvable:$true] %s187_s1 }
   0xe   :  { %88 = vmatpush.msra.mxu1 %v44_v1 }
   0xf   :  { %68 = vmatpush.msra.mxu0 %v43_v4  ;;  %201 = vmatmul.msk.f32.vlgmr.msra.gmra.mxu1 %vm49_vm0, %v42_v3 }
  0x10   :  { %200 = vmatmul.msk.f32.vlgmr.msra.gmra.mxu0 %vm49_vm0, %v42_v3  ;;  %108 = vmatpush.msra.mxu2 %v45_v10 }
  0x11   :  { %202 = vmatmul.msk.f32.vlgmr.msra.gmra.mxu2 %vm49_vm0, %v42_v3 }
  0x8c   :  { %v90_v5 = vpop.f32.mrf.mxu1 }
  0x8d   :  { %128 = vmatpush.xpose.msra.mxu3 %v90_v5  ;;  %v70_v6 = vpop.f32.mrf.mxu0 }
  0x90   :  { %129 = vmatmul.f32.vlgmr.msra.gmra.mxu3 %v70_v6 }
  0x94   :  { %v110_v16 = vpop.f32.mrf.mxu2 }
  0x95   :  { %176 = vmatpush.msrb.mxu0 %v110_v16 }
 0x113   :  { %v130_v7 = vpop.f32.mrf.mxu3 }
 0x114   :  { %v134_v8 = vsel %vm133_vm1, %v130_v7, -inf }
 0x115   :  { %135 = vmax.xlane.f32.xlu0 %v134_v8 }
 0x188   :  { %v136_v11 = vpop.xlane.xlu0 %135 }
 0x189   :  { %v137_v12 = vsub.f32 %v130_v7, %v136_v11 }
 0x18b   :  { %v138_v13 = vmul.f32 1.442695, %v137_v12 }
 0x18d   :  { %209 = vpow2.f32 %v138_v13 }
 0x193   :  { %v210_v14 = vpop.eup %209 }
 0x194   :  { %v140_v15 = vsel %vm133_vm1, %v210_v14, 0.0 }
 0x195   :  { %141 = vadd.xlane.f32.xlu0 %v140_v15 }
 0x208   :  { %v142_v17 = vpop.xlane.xlu0 %141 }
 0x209   :  { %211 = vrcp.f32 %v142_v17  ;;  %v154_v21 = vand.u32 2147483648, %v142_v17  ;;  %v152_v23 = vand.u32 2147483647, %v142_v17  ;;  %vm148_vm3 = vweird.f32 %v142_v17 }
 0x20b   :  { %v155_v25 = vor.u32 1.1754944e-38, %v154_v21  ;;  %vm153_vm5 = vcmp.eq.f32.partialorder %v152_v23, 8.507059e+37 }
 0x20f   :  { %v212_v18 = vpop.eup %211 }
 0x210   :  { %v144_v19 = vmul.f32 %v212_v18, %v142_v17  ;;  %vm149_vm2 = vweird.f32 %v212_v18 }
 0x211   :  { %vm150_vm4 = vmor %vm148_vm3, %vm149_vm2 }
 0x212   :  { %v145_v20 = vsub.f32 1.0, %v144_v19 }
 0x214   :  { %v146_v22 = vmul.f32 %v212_v18, %v145_v20 }
 0x216   :  { %v147_v24 = vadd.f32 %v212_v18, %v146_v22 }
 0x218   :  { %v151_v26 = vsel %vm150_vm4, %v212_v18, %v147_v24 }
 0x219   :  { %v156_v27 = vsel %vm153_vm5, %v155_v25, %v151_v26 }
 0x21a   :  { %v157_v28 = vmul.f32 %v210_v14, %v156_v27 }
 0x21c   :  { %203 = vmatmul.msk.f32.vlgmr.msrb.gmra.mxu0 %vm133_vm1, %v157_v28 }
 0x299   :  { %v178_v29 = vpop.f32.mrf.mxu0 }
 0x29a   :  { %181 = vst [vmem:[#allocation7] sm:$0xff] %v178_v29 }
 0x29b   :  { %192 = dma.vmem_to_hbm [thread:$0]  %s188_s1, 128, %s190_s23, [#allocation4]  }
 0x29c   :  { %289 = dma.done.wait [#allocation4], 128  }
 0x29d   :  { %290 = vsyncadd [#allocation4], 4294967168 }
 0x29e   :  { %197 = vsyncpa [#allocation3], 1 }
 0x29f   :  { %198 = vsyncpa [#allocation6], 1 }
 0x2a0   :  { %199 = vsyncpa [#allocation4], 1 }

</bundles_post_ra>
